<compile_context>
chip_gen: v7x
topology: tpu7x:2x2x1
jax: 0.10.0
libtpu: 0.0.40
codegen_flags: <defaults>
</compile_context>

<pallas_src>
import functools

import jax
import jax.numpy as jnp
from jax.experimental import pallas as pl
from jax.experimental.pallas import tpu as pltpu


def _round_up(n, m):
    return ((n + m - 1) // m) * m


def dueling_dqn_kernel(
    x_ref,
    w1_ref, w2_ref, wh_ref, whd_ref,
    bias_ref,               # (1, 1024 + head_n) = [b1 | b2 | bh | bhd]
    out_ref,
    *, action_dim, head_n,
):
    bf16 = jnp.bfloat16
    f32 = jnp.float32

    # Zero-cost static ref slices; all cuts on 128-lane boundaries.
    b1 = bias_ref[:, 0:512]
    b2 = bias_ref[:, 512:768]
    bh = bias_ref[:, 768:1024]
    bhd = bias_ref[:, 1024:1024 + head_n]

    x = x_ref[...].astype(bf16)                                            # (TB, S)

    # f1 + relu (bf16 cast fused so only the bf16 copy of h1 stays live)
    h1 = jnp.maximum(
        jnp.dot(x, w1_ref[...], preferred_element_type=f32) + b1, 0.0
    ).astype(bf16)                                                         # (TB, 512)

    # f2 + relu
    h2 = jnp.maximum(
        jnp.dot(h1, w2_ref[...], preferred_element_type=f32) + b2, 0.0
    ).astype(bf16)                                                         # (TB, 256)

    # fused val_hidden | adv_hidden + relu  (one 256-wide matmul instead of two)
    hh = jnp.maximum(
        jnp.dot(h2, wh_ref[...], preferred_element_type=f32) + bh, 0.0
    ).astype(bf16)                                                         # (TB, 256)

    # fused block-diagonal head: col 0 = val, cols 1..A = adv, rest = 0
    r = jnp.dot(hh, whd_ref[...], preferred_element_type=f32) + bhd        # (TB, 128)

    val = r[:, 0:1]                                                        # (TB, 1)
    adv = r[:, 1:1 + action_dim]                                           # (TB, A)
    adv_ave = jnp.mean(adv, axis=1, keepdims=True)                         # (TB, 1)

    # Lane-dense store of all 128 columns; only cols 1..A are meaningful and are
    # sliced out in the wrapper.  Cols 1..A == adv + val - mean(adv).
    out_ref[...] = r + (val - adv_ave)


def prepare_kernel_params(p, action_dim):
    """Cast big weights to bf16, build fused/block-diagonal heads, merge biases."""
    bf16 = jnp.bfloat16

    wh = jnp.concatenate([p["wvh"], p["wah"]], axis=1)                     # (256, 256)
    bh = jnp.concatenate([p["bvh"], p["bah"]], axis=1)                     # (1, 256)

    head_n = _round_up(1 + action_dim, 128)                                # lane-dense
    whd = jnp.zeros((256, head_n), jnp.float32)
    whd = whd.at[0:128, 0:1].set(p["wv"])                                  # val column
    whd = whd.at[128:256, 1:1 + action_dim].set(p["wa"])                   # adv columns
    bhd = jnp.zeros((1, head_n), jnp.float32)
    bhd = bhd.at[0:1, 0:1].set(p["bv"])
    bhd = bhd.at[0:1, 1:1 + action_dim].set(p["ba"])

    # One merged bias DMA instead of four (kernel is DMA-transaction bound at
    # small batch); layout: [b1 (512) | b2 (256) | bh (256) | bhd (head_n)].
    bias = jnp.concatenate([p["b1"], p["b2"], bh, bhd], axis=1)

    return dict(
        w1=p["w1"].astype(bf16),
        w2=p["w2"].astype(bf16),
        wh=wh.astype(bf16),
        whd=whd.astype(bf16),
        bias=bias,
        head_n=head_n,
    )


_MAX_TB = 1024   # ~6-7 MB/tile of activations: fits every generation's default
                 # scoped VMEM (v5e 16 MiB).  On v6e/v7x this could be raised to
                 # 2048 together with vmem_limit_bytes for a further ~1.2x.


def _choose_tiling(batch):
    """Return (tb, b_pad, n_tiles) for the 1-D batch grid."""
    if batch <= 16:
        # Tiny-batch fast path: single tile equal to the full array (exempt from
        # the (8,128) divisibility rule) -> no jnp.pad, minimal launch latency.
        return batch, batch, 1
    b16 = _round_up(batch, 16)            # 16 rows = full bf16 sublane packing
    # >=2 tiles once there is real work, so v7x's two TensorCores can split the
    # batch via dimension_semantics=("parallel",); no-op on v5e/v6e.
    min_tiles = 2 if b16 >= 256 else 1
    n_tiles = max(min_tiles, pl.cdiv(b16, _MAX_TB))
    tb = _round_up(pl.cdiv(b16, n_tiles), 16)
    b_pad = n_tiles * tb                  # waste <= 15 + n_tiles*15 rows, never ~tb
    return tb, b_pad, n_tiles


def dueling_dqn_forward(x, kp, action_dim):
    """x: (batch, state_dim) float32; kp: output of prepare_kernel_params."""
    batch, state_dim = x.shape
    head_n = kp["head_n"]

    tb, b_pad, n_tiles = _choose_tiling(batch)
    if b_pad != batch:
        x = jnp.pad(x, ((0, b_pad - batch), (0, 0)))

    const = lambda i: (0, 0)  # weights/bias: same block every step -> VMEM resident
    in_specs = [
        pl.BlockSpec((tb, state_dim), lambda i: (i, 0)),
        pl.BlockSpec(kp["w1"].shape, const),
        pl.BlockSpec(kp["w2"].shape, const),
        pl.BlockSpec(kp["wh"].shape, const),
        pl.BlockSpec(kp["whd"].shape, const),
        pl.BlockSpec(kp["bias"].shape, const),
    ]
    out_spec = pl.BlockSpec((tb, head_n), lambda i: (i, 0))

    out = pl.pallas_call(
        functools.partial(dueling_dqn_kernel, action_dim=action_dim, head_n=head_n),
        out_shape=jax.ShapeDtypeStruct((b_pad, head_n), jnp.float32),
        grid=(n_tiles,),
        in_specs=in_specs,
        out_specs=out_spec,
        compiler_params=pltpu.CompilerParams(
            dimension_semantics=("parallel",),
        ),
    )(x, kp["w1"], kp["w2"], kp["wh"], kp["whd"], kp["bias"])

    # Column slice is required (block-diagonal head packs [val | adv | 0-pad]);
    # batch slice is skipped when nothing was padded (tiny-batch fast path).
    if b_pad == batch:
        return out[:, 1:1 + action_dim]
    return out[:batch, 1:1 + action_dim]


def init_params(key, state_dim, action_dim):
    """Deterministic init mirroring PyTorch nn.Linear default: U(-1/sqrt(fan_in), 1/sqrt(fan_in)).
    Weights stored as (in_features, out_features); biases as (1, out_features)."""
    def linear(key, fan_in, fan_out):
        kw, kb = jax.random.split(key)
        bound = 1.0 / jnp.sqrt(fan_in)
        w = jax.random.uniform(kw, (fan_in, fan_out), jnp.float32, -bound, bound)
        b = jax.random.uniform(kb, (1, fan_out), jnp.float32, -bound, bound)
        return w, b

    keys = jax.random.split(key, 6)
    w1, b1 = linear(keys[0], state_dim, 512)
    w2, b2 = linear(keys[1], 512, 256)
    wvh, bvh = linear(keys[2], 256, 128)
    wah, bah = linear(keys[3], 256, 128)
    wv, bv = linear(keys[4], 128, 1)
    wa, ba = linear(keys[5], 128, action_dim)
    return dict(w1=w1, b1=b1, w2=w2, b2=b2, wvh=wvh, bvh=bvh,
                wah=wah, bah=bah, wv=wv, bv=bv, wa=wa, ba=ba)


def reference_forward_bf16(x, p):
    """Pure-JAX reference mirroring the kernel's bf16-weight / f32-accumulate path,
    using the ORIGINAL (un-fused) layer structure to validate the fusion."""
    # TODO(synk): vs an f32 PyTorch Dueling_DQN, bf16 Q deltas (~1e-3 rel) can flip
    # the greedy argmax when the top two Q values are near-ties; validate in RL eval.
    bf16 = jnp.bfloat16
    f32 = jnp.float32
    d = lambda a, w: jnp.dot(a.astype(bf16), w.astype(bf16), preferred_element_type=f32)
    h1 = jnp.maximum(d(x, p["w1"]) + p["b1"], 0.0)
    h2 = jnp.maximum(d(h1, p["w2"]) + p["b2"], 0.0)
    vh = jnp.maximum(d(h2, p["wvh"]) + p["bvh"], 0.0)
    ah = jnp.maximum(d(h2, p["wah"]) + p["bah"], 0.0)
    val = d(vh, p["wv"]) + p["bv"]
    adv = d(ah, p["wa"]) + p["ba"]
    return adv + val - jnp.mean(adv, axis=1, keepdims=True)


if __name__ == "__main__":
    key = jax.random.PRNGKey(0)
    k_params, k_x = jax.random.split(key)

    state_dim = 16
    action_dim = 8

    params = init_params(k_params, state_dim, action_dim)
    kparams = prepare_kernel_params(params, action_dim)

    # Primary tiny-batch (acting/inference) case: exercises the no-pad fast path.
    batch = 2
    x = jax.random.normal(k_x, (batch, state_dim), jnp.float32)
    q = jax.block_until_ready(dueling_dqn_forward(x, kparams, action_dim))
    q_ref = reference_forward_bf16(x, params)
    assert q.shape == (batch, action_dim)
    assert jnp.allclose(q, q_ref, atol=1e-3, rtol=1e-3), "mismatch vs bf16 JAX reference"
    assert jnp.array_equal(jnp.argmax(q, axis=1), jnp.argmax(q_ref, axis=1)), \
        "greedy action mismatch"

    # Extra coverage: single padded tile, and 2-tile grid (v7x dual-TC path).
    for extra_batch in (40, 333):
        k_x, sub = jax.random.split(k_x)
        xb = jax.random.normal(sub, (extra_batch, state_dim), jnp.float32)
        qb = jax.block_until_ready(dueling_dqn_forward(xb, kparams, action_dim))
        qb_ref = reference_forward_bf16(xb, params)
        assert qb.shape == (extra_batch, action_dim)
        assert jnp.allclose(qb, qb_ref, atol=1e-3, rtol=1e-3), \
            f"mismatch vs bf16 JAX reference at batch={extra_batch}"

    print("KERNEL_OK")
</pallas_src>

<mosaic_0001>
module attributes {stable_mosaic.version = 11 : i64} {
  func.func @dueling_dqn_kernel(%arg0: i32, %arg1: memref<2x16xf32, #tpu.memory_space<vmem>>, %arg2: memref<16x512xbf16, #tpu.memory_space<vmem>>, %arg3: memref<512x256xbf16, #tpu.memory_space<vmem>>, %arg4: memref<256x256xbf16, #tpu.memory_space<vmem>>, %arg5: memref<256x128xbf16, #tpu.memory_space<vmem>>, %arg6: memref<1x1152xf32, #tpu.memory_space<vmem>>, %arg7: memref<2x128xf32, #tpu.memory_space<vmem>>) attributes {dimension_semantics = [#tpu.dimension_semantics<parallel>], iteration_bounds = array<i64: 1>, scalar_prefetch = 0 : i64, scratch_operands = 0 : i64, tpu.core_type = #tpu.core_type<tc>, window_params = [{transform_indices = @transform_0, window_bounds = array<i64: 2, 16>}, {pipeline_mode = #tpu.pipeline_mode<synchronous>, transform_indices = @transform_1, window_bounds = array<i64: 16, 512>}, {pipeline_mode = #tpu.pipeline_mode<synchronous>, transform_indices = @transform_2, window_bounds = array<i64: 512, 256>}, {pipeline_mode = #tpu.pipeline_mode<synchronous>, transform_indices = @transform_3, window_bounds = array<i64: 256, 256>}, {pipeline_mode = #tpu.pipeline_mode<synchronous>, transform_indices = @transform_4, window_bounds = array<i64: 256, 128>}, {pipeline_mode = #tpu.pipeline_mode<synchronous>, transform_indices = @transform_5, window_bounds = array<i64: 1, 1152>}, {transform_indices = @transform_6, window_bounds = array<i64: 2, 128>}]} {
    %c0 = arith.constant 0 : index
    %c0_0 = arith.constant 0 : index
    %0 = vector.load %arg6[%c0, %c0_0] : memref<1x1152xf32, #tpu.memory_space<vmem>>, vector<1x512xf32>
    %c0_1 = arith.constant 0 : index
    %c512 = arith.constant 512 : index
    %1 = vector.load %arg6[%c0_1, %c512] : memref<1x1152xf32, #tpu.memory_space<vmem>>, vector<1x256xf32>
    %c0_2 = arith.constant 0 : index
    %c768 = arith.constant 768 : index
    %2 = vector.load %arg6[%c0_2, %c768] : memref<1x1152xf32, #tpu.memory_space<vmem>>, vector<1x256xf32>
    %c0_3 = arith.constant 0 : index
    %c1024 = arith.constant 1024 : index
    %3 = vector.load %arg6[%c0_3, %c1024] : memref<1x1152xf32, #tpu.memory_space<vmem>>, vector<1x128xf32>
    %c0_4 = arith.constant 0 : index
    %c0_5 = arith.constant 0 : index
    %4 = vector.load %arg1[%c0_4, %c0_5] : memref<2x16xf32, #tpu.memory_space<vmem>>, vector<2x16xf32>
    %5 = arith.truncf %4 : vector<2x16xf32> to vector<2x16xbf16>
    %c0_6 = arith.constant 0 : index
    %c0_7 = arith.constant 0 : index
    %6 = vector.load %arg2[%c0_6, %c0_7] : memref<16x512xbf16, #tpu.memory_space<vmem>>, vector<16x512xbf16>
    %cst = arith.constant dense<0.000000e+00> : vector<2x512xf32>
    %7 = tpu.matmul %5, %6, %cst {dimension_numbers = #tpu.dot_dimension_numbers<[1], [0], [0], [1], [0, 0, 1, 1], [], []>} : vector<2x16xbf16>, vector<16x512xbf16>, vector<2x512xf32> -> vector<2x512xf32>
    %8 = vector.broadcast %0 : vector<1x512xf32> to vector<2x512xf32>
    %9 = arith.addf %7, %8 : vector<2x512xf32>
    %cst_8 = arith.constant 0.000000e+00 : f32
    %10 = vector.broadcast %cst_8 : f32 to vector<2x512xf32>
    %11 = arith.maximumf %9, %10 : vector<2x512xf32>
    %12 = arith.truncf %11 : vector<2x512xf32> to vector<2x512xbf16>
    %c0_9 = arith.constant 0 : index
    %c0_10 = arith.constant 0 : index
    %13 = vector.load %arg3[%c0_9, %c0_10] : memref<512x256xbf16, #tpu.memory_space<vmem>>, vector<512x256xbf16>
    %cst_11 = arith.constant dense<0.000000e+00> : vector<2x256xf32>
    %14 = tpu.matmul %12, %13, %cst_11 {dimension_numbers = #tpu.dot_dimension_numbers<[1], [0], [0], [1], [0, 0, 1, 1], [], []>} : vector<2x512xbf16>, vector<512x256xbf16>, vector<2x256xf32> -> vector<2x256xf32>
    %15 = vector.broadcast %1 : vector<1x256xf32> to vector<2x256xf32>
    %16 = arith.addf %14, %15 : vector<2x256xf32>
    %cst_12 = arith.constant 0.000000e+00 : f32
    %17 = vector.broadcast %cst_12 : f32 to vector<2x256xf32>
    %18 = arith.maximumf %16, %17 : vector<2x256xf32>
    %19 = arith.truncf %18 : vector<2x256xf32> to vector<2x256xbf16>
    %c0_13 = arith.constant 0 : index
    %c0_14 = arith.constant 0 : index
    %20 = vector.load %arg4[%c0_13, %c0_14] : memref<256x256xbf16, #tpu.memory_space<vmem>>, vector<256x256xbf16>
    %cst_15 = arith.constant dense<0.000000e+00> : vector<2x256xf32>
    %21 = tpu.matmul %19, %20, %cst_15 {dimension_numbers = #tpu.dot_dimension_numbers<[1], [0], [0], [1], [0, 0, 1, 1], [], []>} : vector<2x256xbf16>, vector<256x256xbf16>, vector<2x256xf32> -> vector<2x256xf32>
    %22 = vector.broadcast %2 : vector<1x256xf32> to vector<2x256xf32>
    %23 = arith.addf %21, %22 : vector<2x256xf32>
    %cst_16 = arith.constant 0.000000e+00 : f32
    %24 = vector.broadcast %cst_16 : f32 to vector<2x256xf32>
    %25 = arith.maximumf %23, %24 : vector<2x256xf32>
    %26 = arith.truncf %25 : vector<2x256xf32> to vector<2x256xbf16>
    %c0_17 = arith.constant 0 : index
    %c0_18 = arith.constant 0 : index
    %27 = vector.load %arg5[%c0_17, %c0_18] : memref<256x128xbf16, #tpu.memory_space<vmem>>, vector<256x128xbf16>
    %cst_19 = arith.constant dense<0.000000e+00> : vector<2x128xf32>
    %28 = tpu.matmul %26, %27, %cst_19 {dimension_numbers = #tpu.dot_dimension_numbers<[1], [0], [0], [1], [0, 0, 1, 1], [], []>} : vector<2x256xbf16>, vector<256x128xbf16>, vector<2x128xf32> -> vector<2x128xf32>
    %29 = vector.broadcast %3 : vector<1x128xf32> to vector<2x128xf32>
    %30 = arith.addf %28, %29 : vector<2x128xf32>
    %31 = vector.extract_strided_slice %30 {offsets = [0, 0], sizes = [2, 1], strides = [1, 1]} : vector<2x128xf32> to vector<2x1xf32>
    %32 = vector.extract_strided_slice %30 {offsets = [0, 1], sizes = [2, 8], strides = [1, 1]} : vector<2x128xf32> to vector<2x8xf32>
    %cst_20 = arith.constant dense<0.000000e+00> : vector<2xf32>
    %33 = vector.multi_reduction <add>, %32, %cst_20 [1] : vector<2x8xf32> to vector<2xf32>
    %34 = vector.shape_cast %33 : vector<2xf32> to vector<2x1xf32>
    %cst_21 = arith.constant 8.000000e+00 : f32
    %35 = vector.broadcast %cst_21 : f32 to vector<2x1xf32>
    %36 = arith.divf %34, %35 : vector<2x1xf32>
    %37 = arith.subf %31, %36 : vector<2x1xf32>
    %38 = vector.broadcast %37 : vector<2x1xf32> to vector<2x128xf32>
    %39 = arith.addf %30, %38 : vector<2x128xf32>
    %c0_22 = arith.constant 0 : index
    %c0_23 = arith.constant 0 : index
    %40 = vector.load %arg7[%c0_22, %c0_23] : memref<2x128xf32, #tpu.memory_space<vmem>>, vector<2x128xf32>
    tpu.vector_store %arg7[%c0_22, %c0_23], %39 {strides = array<i32>} : memref<2x128xf32, #tpu.memory_space<vmem>>, vector<2x128xf32>,
    return
  }
  func.func @transform_0(%arg0: i32) -> (i32, i32) {
    %c0_i32 = arith.constant 0 : i32
    %c0_i32_0 = arith.constant 0 : i32
    return %arg0, %c0_i32 : i32, i32
  }
  func.func @transform_1(%arg0: i32) -> (i32, i32) {
    %c0_i32 = arith.constant 0 : i32
    %c0_i32_0 = arith.constant 0 : i32
    %c0_i32_1 = arith.constant 0 : i32
    return %c0_i32, %c0_i32_0 : i32, i32
  }
  func.func @transform_2(%arg0: i32) -> (i32, i32) {
    %c0_i32 = arith.constant 0 : i32
    %c0_i32_0 = arith.constant 0 : i32
    %c0_i32_1 = arith.constant 0 : i32
    return %c0_i32, %c0_i32_0 : i32, i32
  }
  func.func @transform_3(%arg0: i32) -> (i32, i32) {
    %c0_i32 = arith.constant 0 : i32
    %c0_i32_0 = arith.constant 0 : i32
    %c0_i32_1 = arith.constant 0 : i32
    return %c0_i32, %c0_i32_0 : i32, i32
  }
  func.func @transform_4(%arg0: i32) -> (i32, i32) {
    %c0_i32 = arith.constant 0 : i32
    %c0_i32_0 = arith.constant 0 : i32
    %c0_i32_1 = arith.constant 0 : i32
    return %c0_i32, %c0_i32_0 : i32, i32
  }
  func.func @transform_5(%arg0: i32) -> (i32, i32) {
    %c0_i32 = arith.constant 0 : i32
    %c0_i32_0 = arith.constant 0 : i32
    %c0_i32_1 = arith.constant 0 : i32
    return %c0_i32, %c0_i32_0 : i32, i32
  }
  func.func @transform_6(%arg0: i32) -> (i32, i32) {
    %c0_i32 = arith.constant 0 : i32
    %c0_i32_0 = arith.constant 0 : i32
    return %arg0, %c0_i32 : i32, i32
  }
}

</mosaic_0001>

<bundles_post_ra>
// kernel: tpu_custom_call.1
= control target key start
LH: loop header
LB: loop body
LE: loop exit
PB: predicated region body
PF: predicated region fallthrough
CT: control target
= control target key end

     0   :  { %11 = vsyncpa [#allocation3], 0  ;;  %s1809_s0 = inlined_call_operand.hbm [shape: f32[2,16], index: 0, kind: input, shape index: {}]   ;;  %s1810_s1 = inlined_call_operand.hbm [shape: bf16[16,512], index: 1, kind: input, shape index: {}]   ;;  %s1811_s2 = inlined_call_operand.hbm [shape: bf16[512,256], index: 2, kind: input, shape index: {}]   ;;  %s1812_s3 = inlined_call_operand.hbm [shape: bf16[256,256], index: 3, kind: input, shape index: {}]   ;;  %s1813_s4 = inlined_call_operand.hbm [shape: bf16[256,128], index: 4, kind: input, shape index: {}]   ;;  %s1814_s5 = inlined_call_operand.vmem [shape: f32[1,1152], index: 5, kind: input, shape index: {}]   ;;  %s1815_s6 = inlined_call_operand.hbm [shape: f32[2,128], index: 6, kind: output, shape index: {}]  }
   0x1   :  { %12 = vsyncpa [#allocation6], 0 }
   0x2   :  { %13 = vsyncpa [#allocation9], 0 }
   0x3   :  { %14 = vsyncpa [#allocation4], 0  ;;  %s1643_s21 = smov [#allocation5]   ;;  %s1503_s25 = scalar_lea.hbm %s1810_s1, 512 }
   0x4   :  { %s30_s22 = sshll.u32 %s1643_s21, 4  ;;  %p1504_p0 = scmp.ne.s32.totalorder %s1810_s1, %s1503_s25  ;;  %s31_s22 = int_to_ptr.vmem [resolvable:$true] %s30_s22 }
   0x5   :  { %p1507_p1 = scmp.lt.u32.totalorder %s1503_s25, %s1810_s1 }
   0x7   :  { %p1509_p2 = pnand %p1507_p1, %p1504_p0 }
   0x9   :  { %1512 = shalt.err (!%p1509_p2)
}
   0xa   :  { %s1513_s30 = scalar_lea.vmem %s31_s22, 512  ;;  %p1518_p4 = scmp.lt.s32.totalorder %s31_s22, %s31_s22 }
   0xb   :  { %p1514_p3 = scmp.ne.s32.totalorder %s31_s22, %s1513_s30  ;;  %p1519_p5 = scmp.lt.s32.totalorder %s1513_s30, %s1513_s30 }
   0xd   :  { %p1520_p6 = por %p1519_p5, %p1518_p4 }
   0xf   :  { %p1521_p7 = pnand %p1520_p6, %p1514_p3 }
  0x11   :  { %1524 = shalt.err (!%p1521_p7)
}
  0x12   :  { %s1644_s7 = smov 256   ;;  %s1645_s8 = smov 16  }
  0x13   :  { %36 = dma.hbm_to_vmem [thread:$0]  %s1810_s1, 512, %s31_s22, [#allocation6], %s1644_s7, %s1644_s7, %s1645_s8  }
  0x14   :  { %s1646_s11 = smov [#allocation8]   ;;  %s1647_s13 = smov [#allocation2]  }
  0x15   :  { %s54_s12 = sshll.u32 %s1646_s11, 4  ;;  %s21_s14 = sshll.u32 %s1647_s13, 4  ;;  %s55_s12 = int_to_ptr.vmem [resolvable:$true] %s54_s12  ;;  %s22_s14 = int_to_ptr.vmem [resolvable:$true] %s21_s14 }
  0x16   :  { %s1525_s17 = scalar_lea.hbm %s1812_s3, 4096 }
  0x17   :  { %p1526_p8 = scmp.ne.s32.totalorder %s1812_s3, %s1525_s17  ;;  %p1529_p9 = scmp.lt.u32.totalorder %s1525_s17, %s1812_s3 }
  0x19   :  { %p1531_p10 = pnand %p1529_p9, %p1526_p8 }
  0x1b   :  { %1534 = shalt.err (!%p1531_p10)
}
  0x1c   :  { %s1535_s1 = scalar_lea.vmem %s55_s12, 4096  ;;  %p1540_p12 = scmp.lt.s32.totalorder %s55_s12, %s55_s12 }
  0x1d   :  { %p1536_p11 = scmp.ne.s32.totalorder %s55_s12, %s1535_s1  ;;  %p1541_p13 = scmp.lt.s32.totalorder %s1535_s1, %s1535_s1 }
  0x1f   :  { %p1542_p0 = por %p1541_p13, %p1540_p12 }
  0x21   :  { %p1543_p1 = pnand %p1542_p0, %p1536_p11 }
  0x23   :  { %1546 = shalt.err (!%p1543_p1)
}
  0x24   :  { %s1648_s22 = smov 128   ;;  %s1649_s23 = smov 8  }
  0x25   :  { %60 = dma.hbm_to_vmem [thread:$0]  %s1812_s3, 4096, %s55_s12, [#allocation9], %s1648_s22, %s1648_s22, %s1649_s23  }
  0x26   :  { %s1547_s28 = scalar_lea.hbm %s1809_s0, 32 }
  0x27   :  { %p1548_p2 = scmp.ne.s32.totalorder %s1809_s0, %s1547_s28  ;;  %p1551_p3 = scmp.lt.u32.totalorder %s1547_s28, %s1809_s0 }
  0x29   :  { %p1553_p4 = pnand %p1551_p3, %p1548_p2 }
  0x2b   :  { %1556 = shalt.err (!%p1553_p4)
}
  0x2c   :  { %s1557_s9 = scalar_lea.vmem %s22_s14, 32  ;;  %p1562_p6 = scmp.lt.s32.totalorder %s22_s14, %s22_s14 }
  0x2d   :  { %p1558_p5 = scmp.ne.s32.totalorder %s22_s14, %s1557_s9  ;;  %p1563_p7 = scmp.lt.s32.totalorder %s1557_s9, %s1557_s9 }
  0x2f   :  { %p1564_p8 = por %p1563_p7, %p1562_p6 }
  0x31   :  { %p1565_p9 = pnand %p1564_p8, %p1558_p5 }
  0x33   :  { %1568 = shalt.err (!%p1565_p9)
}
  0x34   :  { %24 = dma.hbm_to_vmem [thread:$0]  %s1809_s0, 32, %s22_s14, [#allocation3]  }
  0x35   :  { %s1650_s11 = smov [#allocation7]   ;;  %s1651_s13 = smov [#allocation10]  }
  0x36   :  { %s42_s12 = sshll.u32 %s1650_s11, 4  ;;  %s66_s15 = sshll.u32 %s1651_s13, 4  ;;  %s43_s12 = int_to_ptr.vmem [resolvable:$true] %s42_s12  ;;  %s67_s15 = int_to_ptr.vmem [resolvable:$true] %s66_s15 }
  0x37   :  { %s1569_s18 = scalar_lea.hbm %s1811_s2, 8192 }
  0x38   :  { %p1570_p10 = scmp.ne.s32.totalorder %s1811_s2, %s1569_s18  ;;  %p1573_p11 = scmp.lt.u32.totalorder %s1569_s18, %s1811_s2 }
  0x3a   :  { %p1575_p12 = pnand %p1573_p11, %p1570_p10 }
  0x3c   :  { %1578 = shalt.err (!%p1575_p12)
}
  0x3d   :  { %s1579_s0 = scalar_lea.vmem %s43_s12, 8192  ;;  %p1584_p0 = scmp.lt.s32.totalorder %s43_s12, %s43_s12 }
  0x3e   :  { %p1580_p13 = scmp.ne.s32.totalorder %s43_s12, %s1579_s0  ;;  %p1585_p1 = scmp.lt.s32.totalorder %s1579_s0, %s1579_s0 }
  0x40   :  { %p1586_p2 = por %p1585_p1, %p1584_p0 }
  0x42   :  { %p1587_p3 = pnand %p1586_p2, %p1580_p13 }
  0x44   :  { %1590 = shalt.err (!%p1587_p3)
}
  0x45   :  { %48 = dma.hbm_to_vmem [thread:$0]  %s1811_s2, 8192, %s43_s12, [#allocation6], %s1648_s22, %s1648_s22, %s1649_s23  }
  0x46   :  { %s1591_s27 = scalar_lea.hbm %s1813_s4, 2048 }
  0x47   :  { %p1592_p4 = scmp.ne.s32.totalorder %s1813_s4, %s1591_s27  ;;  %p1595_p5 = scmp.lt.u32.totalorder %s1591_s27, %s1813_s4 }
  0x49   :  { %p1597_p6 = pnand %p1595_p5, %p1592_p4 }
  0x4b   :  { %1600 = shalt.err (!%p1597_p6)
}
  0x4c   :  { %s1601_s8 = scalar_lea.vmem %s67_s15, 2048  ;;  %p1606_p8 = scmp.lt.s32.totalorder %s67_s15, %s67_s15 }
  0x4d   :  { %p1602_p7 = scmp.ne.s32.totalorder %s67_s15, %s1601_s8  ;;  %p1607_p9 = scmp.lt.s32.totalorder %s1601_s8, %s1601_s8 }
  0x4f   :  { %p1608_p10 = por %p1607_p9, %p1606_p8 }
  0x51   :  { %p1609_p11 = pnand %p1608_p10, %p1602_p7 }
  0x53   :  { %1612 = shalt.err (!%p1609_p11)
}
  0x54   :  { %s1652_s2 = smov 64   ;;  %s1653_s22 = smov 4  }
  0x55   :  { %72 = dma.hbm_to_vmem [thread:$0]  %s1813_s4, 2048, %s67_s15, [#allocation9], %s1652_s2, %s1652_s2, %s1653_s22  }
  0x56   :  { %1635 = dma.done.wait [#allocation3], 32  }
  0x57   :  { %1636 = vsyncadd [#allocation3], 4294967264 }
  0x58   :  { %1637 = dma.done.wait [#allocation6], 8704  }
  0x59   :  { %1638 = vsyncadd [#allocation6], 4294958592 }
  0x5a   :  { %1639 = dma.done.wait [#allocation9], 6144  }
  0x5b   :  { %1640 = vsyncadd [#allocation9], 4294961152  ;;  %v1654_v0 = vmov 0   ;;  %v1337_v1 = vld [vmem:[#allocation5 + $0x4] ss:$16 sps:$4 sm:$0xff]   ;;  %vm142_vm0 = vcmask 130048   ;;  %v102_v62 = vlaneseq }
  0x5c   :  { %178 = vmatprep.mubr.bf16.mxu1 %v1654_v0  ;;  %1335 = vset.pattern.permute.xlu1 %v1654_v0  ;;  %v1339_v2 = vld [vmem:[#allocation5] ss:$16 sps:$4 sm:$0xff]   ;;  %v95_v3 = vld [vmem:[#allocation2] sm:$0x3]  ;;  %v1340_v5 = vld [vmem:[#allocation5 + $0x8] ss:$16 sps:$4 sm:$0xff]  }
  0x5d   :  { %1336 = vset.pattern.permute.xlu0 %v1654_v0  ;;  %146 = vmatprep.subr.bf16.mxu1 %v1337_v1  ;;  %v96_v4 = vpack.c.bf16 %v95_v3, %v95_v3  ;;  %v1342_v6 = vld [vmem:[#allocation5 + $0xc] ss:$16 sps:$4 sm:$0xff]   ;;  %v1345_v8 = vld [vmem:[#allocation7] ss:$8 sps:$4 sm:$0xff]   ;;  %v1348_v10 = vld [vmem:[#allocation7 + $0x10] ss:$8 sps:$4 sm:$0xff]  }
  0x5e   :  { %147 = vmatpush1.bf16.msra.mxu1 %v1339_v2  ;;  %v1343_v7 = vld [vmem:[#allocation7 + $0x4] ss:$8 sps:$4 sm:$0xff]   ;;  %v1346_v9 = vld [vmem:[#allocation7 + $0x14] ss:$8 sps:$4 sm:$0xff]   ;;  %v1351_v12 = vld [vmem:[#allocation7 + $0x20] ss:$8 sps:$4 sm:$0xff]  }
  0x5f   :  { %187 = vmatprep.subr.bf16.mxu1 %v1342_v6  ;;  %631 = vmatprep.subr.bf16.mxu0 %v1343_v7  ;;  %v1349_v11 = vld [vmem:[#allocation7 + $0x24] ss:$8 sps:$4 sm:$0xff]   ;;  %v1352_v13 = vld [vmem:[#allocation7 + $0x34] ss:$8 sps:$4 sm:$0xff]   ;;  %v1354_v14 = vld [vmem:[#allocation7 + $0x30] ss:$8 sps:$4 sm:$0xff]  }
  0x60   :  { %632 = vmatpush1.bf16.msra.mxu0 %v1345_v8  ;;  %v1355_v15 = vld [vmem:[#allocation7 + $0x44] ss:$8 sps:$4 sm:$0xff]   ;;  %v1357_v16 = vld [vmem:[#allocation7 + $0x40] ss:$8 sps:$4 sm:$0xff]   ;;  %v1358_v17 = vld [vmem:[#allocation7 + $0x54] ss:$8 sps:$4 sm:$0xff]  }
  0x61   :  { %1178 = vmatmul.mubr.msk.bf16.vlgmr.msra.gmra.mrb[0].mxu1 %vm142_vm0, %v96_v4  ;;  %633 = vmatprep.subr.bf16.mxu0 %v1346_v9  ;;  %v1360_v18 = vld [vmem:[#allocation7 + $0x50] ss:$8 sps:$4 sm:$0xff]   ;;  %v1361_v19 = vld [vmem:[#allocation7 + $0x64] ss:$8 sps:$4 sm:$0xff]   ;;  %v1363_v20 = vld [vmem:[#allocation7 + $0x60] ss:$8 sps:$4 sm:$0xff]  }
  0x62   :  { %188 = vmatpush1.bf16.msra.mxu1 %v1340_v5  ;;  %219 = vmatprep.mubr.bf16.mxu1 %v1654_v0  ;;  %v1364_v21 = vld [vmem:[#allocation7 + $0x74] ss:$8 sps:$4 sm:$0xff]   ;;  %v1366_v22 = vld [vmem:[#allocation7 + $0x70] ss:$8 sps:$4 sm:$0xff]   ;;  %v1367_v23 = vld [vmem:[#allocation7 + $0x84] ss:$8 sps:$4 sm:$0xff]  }
  0x63   :  { %v1369_v24 = vld [vmem:[#allocation7 + $0x80] ss:$8 sps:$4 sm:$0xff]   ;;  %v1370_v25 = vld [vmem:[#allocation7 + $0x94] ss:$8 sps:$4 sm:$0xff]   ;;  %v1372_v26 = vld [vmem:[#allocation7 + $0x90] ss:$8 sps:$4 sm:$0xff]  }
  0x64   :  { %634 = vmatpush1.bf16.msra.mxu0 %v1348_v10  ;;  %v1373_v27 = vld [vmem:[#allocation7 + $0xa4] ss:$8 sps:$4 sm:$0xff]   ;;  %v1375_v28 = vld [vmem:[#allocation7 + $0xa0] ss:$8 sps:$4 sm:$0xff]   ;;  %v1376_v29 = vld [vmem:[#allocation7 + $0xb4] ss:$8 sps:$4 sm:$0xff]  }
  0x65   :  { %635 = vmatprep.subr.bf16.mxu0 %v1349_v11  ;;  %v1378_v30 = vld [vmem:[#allocation7 + $0xb0] ss:$8 sps:$4 sm:$0xff]   ;;  %v1379_v31 = vld [vmem:[#allocation7 + $0xc4] ss:$8 sps:$4 sm:$0xff]   ;;  %v1381_v32 = vld [vmem:[#allocation7 + $0xc0] ss:$8 sps:$4 sm:$0xff]  }
  0x66   :  { %v1382_v33 = vld [vmem:[#allocation7 + $0xd4] ss:$8 sps:$4 sm:$0xff]   ;;  %v1384_v34 = vld [vmem:[#allocation7 + $0xd0] ss:$8 sps:$4 sm:$0xff]   ;;  %v1385_v35 = vld [vmem:[#allocation7 + $0xe4] ss:$8 sps:$4 sm:$0xff]  }
  0x67   :  { %v1387_v36 = vld [vmem:[#allocation7 + $0xe0] ss:$8 sps:$4 sm:$0xff]   ;;  %v1388_v37 = vld [vmem:[#allocation7 + $0xf4] ss:$8 sps:$4 sm:$0xff]   ;;  %v1390_v38 = vld [vmem:[#allocation7 + $0xf0] ss:$8 sps:$4 sm:$0xff]  }
  0x68   :  { %636 = vmatpush1.bf16.msra.mxu0 %v1351_v12  ;;  %v1393_v39 = vld [vmem:[#allocation7 + $0x104] ss:$8 sps:$4 sm:$0xff]   ;;  %v1439_v40 = vld [vmem:[#allocation8] ss:$8 sps:$4 sm:$0xff]   ;;  %v1444_v42 = vld [vmem:[#allocation8 + $0x14] ss:$8 sps:$4 sm:$0xff]  }
  0x69   :  { %1179 = vmatmul.mubr.msk.bf16.vlgmr.msra.gmra.mrb[4].mxu1 %vm142_vm0, %v96_v4  ;;  %637 = vmatprep.subr.bf16.mxu0 %v1352_v13  ;;  %v1441_v41 = vld [vmem:[#allocation8 + $0x4] ss:$8 sps:$4 sm:$0xff]   ;;  %v1442_v43 = vld [vmem:[#allocation8 + $0x10] ss:$8 sps:$4 sm:$0xff]   ;;  %v1445_v45 = vld [vmem:[#allocation8 + $0x20] ss:$8 sps:$4 sm:$0xff]  }
  0x6a   :  { %920 = vmatprep.subr.bf16.mxu1 %v1441_v41  ;;  %v1447_v44 = vld [vmem:[#allocation8 + $0x24] ss:$8 sps:$4 sm:$0xff]   ;;  %v1450_v46 = vld [vmem:[#allocation8 + $0x34] ss:$8 sps:$4 sm:$0xff]   ;;  %v1448_v47 = vld [vmem:[#allocation8 + $0x30] ss:$8 sps:$4 sm:$0xff]  }
  0x6b   :  { %921 = vmatpush1.bf16.msra.mxu1 %v1439_v40  ;;  %v1453_v48 = vld [vmem:[#allocation8 + $0x44] ss:$8 sps:$4 sm:$0xff]   ;;  %v1451_v49 = vld [vmem:[#allocation8 + $0x40] ss:$8 sps:$4 sm:$0xff]   ;;  %v1456_v50 = vld [vmem:[#allocation8 + $0x54] ss:$8 sps:$4 sm:$0xff]  }
  0x6c   :  { %638 = vmatpush1.bf16.msra.mxu0 %v1354_v14  ;;  %922 = vmatprep.subr.bf16.mxu1 %v1444_v42  ;;  %v1454_v51 = vld [vmem:[#allocation8 + $0x50] ss:$8 sps:$4 sm:$0xff]   ;;  %v1459_v52 = vld [vmem:[#allocation8 + $0x64] ss:$8 sps:$4 sm:$0xff]   ;;  %v1457_v53 = vld [vmem:[#allocation8 + $0x60] ss:$8 sps:$4 sm:$0xff]  }
  0x6d   :  { %639 = vmatprep.subr.bf16.mxu0 %v1355_v15  ;;  %v1462_v54 = vld [vmem:[#allocation8 + $0x74] ss:$8 sps:$4 sm:$0xff]   ;;  %v1460_v55 = vld [vmem:[#allocation8 + $0x70] ss:$8 sps:$4 sm:$0xff]   ;;  %v1465_v56 = vld [vmem:[#allocation8 + $0x84] ss:$8 sps:$4 sm:$0xff]  }
  0x6e   :  { %v1463_v57 = vld [vmem:[#allocation8 + $0x80] ss:$8 sps:$4 sm:$0xff]   ;;  %v1468_v58 = vld [vmem:[#allocation8 + $0x94] ss:$8 sps:$4 sm:$0xff]   ;;  %v1466_v59 = vld [vmem:[#allocation8 + $0x90] ss:$8 sps:$4 sm:$0xff]  }
  0x6f   :  { %923 = vmatpush1.bf16.msra.mxu1 %v1442_v43  ;;  %v1471_v60 = vld [vmem:[#allocation8 + $0xa4] ss:$8 sps:$4 sm:$0xff]   ;;  %v1469_v61 = vld [vmem:[#allocation8 + $0xa0] ss:$8 sps:$4 sm:$0xff]   ;;  %v1474_v63 = vld [vmem:[#allocation8 + $0xb4] ss:$8 sps:$4 sm:$0xff]  }
  0x70   :  { %640 = vmatpush1.bf16.msra.mxu0 %v1357_v16  ;;  %924 = vmatprep.subr.bf16.mxu1 %v1447_v44  ;;  %v1472_v0 = vld [vmem:[#allocation8 + $0xb0] ss:$8 sps:$4 sm:$0xff]   ;;  %v1760_v1 = vshrl.u32 %v102_v62, 7  ;;  %v1477_v2 = vld [vmem:[#allocation8 + $0xc4] ss:$8 sps:$4 sm:$0xff]   ;;  %s1655_s17 = smov 127  }
  0x71   :  { %641 = vmatprep.subr.bf16.mxu0 %v1358_v17  ;;  %v1475_v3 = vld [vmem:[#allocation8 + $0xc0] ss:$8 sps:$4 sm:$0xff]   ;;  %v1480_v5 = vld [vmem:[#allocation8 + $0xd4] ss:$8 sps:$4 sm:$0xff]   ;;  %v1768_v6 = vld [vmem:[%s1814_s5] sm:$0xf] }
  0x72   :  { %v1763_v4 = vsub.s32 0, %v1760_v1  ;;  %v1771_v7 = vsub.s32 1, %v1760_v1  ;;  %v1478_v8 = vld [vmem:[#allocation8 + $0xd0] ss:$8 sps:$4 sm:$0xff]   ;;  %v116_v16 = vsub.s32 3, %v1760_v1  ;;  %vm1143_vm1 = vcmask 58368  }
  0x73   :  { %925 = vmatpush1.bf16.msra.mxu1 %v1445_v45  ;;  %v1406_v40 = vld [vmem:[#allocation7 + $0x150] ss:$8 sps:$4 sm:$0xff]   ;;  %v1411_v41 = vld [vmem:[#allocation7 + $0x164] ss:$8 sps:$4 sm:$0xff]   ;;  %v1409_v42 = vld [vmem:[#allocation7 + $0x160] ss:$8 sps:$4 sm:$0xff]  }
  0x74   :  { %642 = vmatpush1.bf16.msra.mxu0 %v1360_v18  ;;  %926 = vmatprep.subr.bf16.mxu1 %v1450_v46  ;;  %v105_v9 = vrot.slane %v1768_v6, %v1763_v4  ;;  %v109_v10 = vrot.slane %v1768_v6, %v1771_v7  ;;  %v1414_v43 = vld [vmem:[#allocation7 + $0x174] ss:$8 sps:$4 sm:$0xff]   ;;  %v1412_v44 = vld [vmem:[#allocation7 + $0x170] ss:$8 sps:$4 sm:$0xff]   ;;  %v1417_v45 = vld [vmem:[#allocation7 + $0x184] ss:$8 sps:$4 sm:$0xff]  }
  0x75   :  { %643 = vmatprep.subr.bf16.mxu0 %v1361_v19  ;;  %v1415_v46 = vld [vmem:[#allocation7 + $0x180] ss:$8 sps:$4 sm:$0xff]   ;;  %v1438_v62 = vld [vmem:[#allocation7 + $0x1f4] ss:$8 sps:$4 sm:$0xff]   ;;  %s1656_s18 = smov [#allocation11]  }
  0x76   :  { %s1163_s19 = sshll.u32 %s1656_s18, 4  ;;  %s1164_s19 = int_to_ptr.vmem [resolvable:$true] %s1163_s19 }
  0x77   :  { %927 = vmatpush1.bf16.msra.mxu1 %v1448_v47  ;;  %v1420_v47 = vld [vmem:[#allocation7 + $0x194] ss:$8 sps:$4 sm:$0xff]   ;;  %p1618_p13 = scmp.lt.s32.totalorder %s1164_s19, %s1164_s19 }
  0x78   :  { %644 = vmatpush1.bf16.msra.mxu0 %v1363_v20  ;;  %928 = vmatprep.subr.bf16.mxu1 %v1453_v48  ;;  %v1418_v48 = vld [vmem:[#allocation7 + $0x190] ss:$8 sps:$4 sm:$0xff]  }
  0x79   :  { %645 = vmatprep.subr.bf16.mxu0 %v1364_v21  ;;  %v1391_v21 = vld [vmem:[#allocation7 + $0x100] ss:$8 sps:$4 sm:$0xff]  }
  0x7b   :  { %929 = vmatpush1.bf16.msra.mxu1 %v1451_v49  ;;  %v1423_v49 = vld [vmem:[#allocation7 + $0x1a4] ss:$8 sps:$4 sm:$0xff]  }
  0x7c   :  { %646 = vmatpush1.bf16.msra.mxu0 %v1366_v22  ;;  %930 = vmatprep.subr.bf16.mxu1 %v1456_v50  ;;  %v117_v22 = vrot.slane %v1768_v6, %v116_v16  ;;  %v1421_v50 = vld [vmem:[#allocation7 + $0x1a0] ss:$8 sps:$4 sm:$0xff]  }
  0x7d   :  { %647 = vmatprep.subr.bf16.mxu0 %v1367_v23 }
  0x7f   :  { %931 = vmatpush1.bf16.msra.mxu1 %v1454_v51  ;;  %v1426_v51 = vld [vmem:[#allocation7 + $0x1b4] ss:$8 sps:$4 sm:$0xff]  }
  0x80   :  { %648 = vmatpush1.bf16.msra.mxu0 %v1369_v24  ;;  %932 = vmatprep.subr.bf16.mxu1 %v1459_v52  ;;  %v1396_v24 = vld [vmem:[#allocation7 + $0x114] ss:$8 sps:$4 sm:$0xff]   ;;  %v1424_v52 = vld [vmem:[#allocation7 + $0x1b0] ss:$8 sps:$4 sm:$0xff]  }
  0x81   :  { %649 = vmatprep.subr.bf16.mxu0 %v1370_v25 }
  0x83   :  { %933 = vmatpush1.bf16.msra.mxu1 %v1457_v53  ;;  %v1429_v53 = vld [vmem:[#allocation7 + $0x1c4] ss:$8 sps:$4 sm:$0xff]  }
  0x84   :  { %650 = vmatpush1.bf16.msra.mxu0 %v1372_v26  ;;  %934 = vmatprep.subr.bf16.mxu1 %v1462_v54  ;;  %v1427_v54 = vld [vmem:[#allocation7 + $0x1c0] ss:$8 sps:$4 sm:$0xff]  }
  0x85   :  { %651 = vmatprep.subr.bf16.mxu0 %v1373_v27  ;;  %v1394_v27 = vld [vmem:[#allocation7 + $0x110] ss:$8 sps:$4 sm:$0xff]  }
  0x87   :  { %935 = vmatpush1.bf16.msra.mxu1 %v1460_v55  ;;  %v112_v55 = vsub.s32 2, %v1760_v1  ;;  %v1483_v1 = vld [vmem:[#allocation8 + $0xe4] ss:$8 sps:$4 sm:$0xff]  }
  0x88   :  { %652 = vmatpush1.bf16.msra.mxu0 %v1375_v28  ;;  %936 = vmatprep.subr.bf16.mxu1 %v1465_v56  ;;  %v1432_v56 = vld [vmem:[#allocation7 + $0x1d4] ss:$8 sps:$4 sm:$0xff]  }
  0x89   :  { %653 = vmatprep.subr.bf16.mxu0 %v1376_v29 }
  0x8b   :  { %937 = vmatpush1.bf16.msra.mxu1 %v1463_v57  ;;  %v1430_v57 = vld [vmem:[#allocation7 + $0x1d0] ss:$8 sps:$4 sm:$0xff]  }
  0x8c   :  { %654 = vmatpush1.bf16.msra.mxu0 %v1378_v30  ;;  %938 = vmatprep.subr.bf16.mxu1 %v1468_v58  ;;  %v1399_v30 = vld [vmem:[#allocation7 + $0x124] ss:$8 sps:$4 sm:$0xff]   ;;  %v113_v58 = vrot.slane %v1768_v6, %v112_v55  ;;  %v1484_v6 = vld [vmem:[#allocation8 + $0xf0] ss:$8 sps:$4 sm:$0xff]  }
  0x8d   :  { %655 = vmatprep.subr.bf16.mxu0 %v1379_v31 }
  0x8f   :  { %939 = vmatpush1.bf16.msra.mxu1 %v1466_v59  ;;  %v1435_v59 = vld [vmem:[#allocation7 + $0x1e4] ss:$8 sps:$4 sm:$0xff]  }
  0x90   :  { %656 = vmatpush1.bf16.msra.mxu0 %v1381_v32  ;;  %940 = vmatprep.subr.bf16.mxu1 %v1471_v60  ;;  %v1433_v60 = vld [vmem:[#allocation7 + $0x1e0] ss:$8 sps:$4 sm:$0xff]  }
  0x91   :  { %657 = vmatprep.subr.bf16.mxu0 %v1382_v33  ;;  %v1397_v33 = vld [vmem:[#allocation7 + $0x120] ss:$8 sps:$4 sm:$0xff]  }
  0x93   :  { %941 = vmatpush1.bf16.msra.mxu1 %v1469_v61 }
  0x94   :  { %658 = vmatpush1.bf16.msra.mxu0 %v1384_v34  ;;  %942 = vmatprep.subr.bf16.mxu1 %v1474_v63  ;;  %v1436_v63 = vld [vmem:[#allocation7 + $0x1f0] ss:$8 sps:$4 sm:$0xff]  }
  0x95   :  { %659 = vmatprep.subr.bf16.mxu0 %v1385_v35  ;;  %v1402_v35 = vld [vmem:[#allocation7 + $0x134] ss:$8 sps:$4 sm:$0xff]  }
  0x97   :  { %943 = vmatpush1.bf16.msra.mxu1 %v1472_v0 }
  0x98   :  { %660 = vmatpush1.bf16.msra.mxu0 %v1387_v36  ;;  %944 = vmatprep.subr.bf16.mxu1 %v1477_v2  ;;  %v1400_v36 = vld [vmem:[#allocation7 + $0x130] ss:$8 sps:$4 sm:$0xff]  }
  0x99   :  { %661 = vmatprep.subr.bf16.mxu0 %v1388_v37  ;;  %v1405_v37 = vld [vmem:[#allocation7 + $0x144] ss:$8 sps:$4 sm:$0xff]  }
  0x9b   :  { %945 = vmatpush1.bf16.msra.mxu1 %v1475_v3  ;;  %v1481_v3 = vld [vmem:[#allocation8 + $0xe0] ss:$8 sps:$4 sm:$0xff]  }
  0x9c   :  { %662 = vmatpush1.bf16.msra.mxu0 %v1390_v38  ;;  %946 = vmatprep.subr.bf16.mxu1 %v1480_v5  ;;  %v1403_v38 = vld [vmem:[#allocation7 + $0x140] ss:$8 sps:$4 sm:$0xff]   ;;  %v1486_v5 = vld [vmem:[#allocation8 + $0xf4] ss:$8 sps:$4 sm:$0xff]  }
  0x9d   :  { %672 = vmatprep.subr.bf16.mxu0 %v1393_v39  ;;  %v1408_v39 = vld [vmem:[#allocation7 + $0x154] ss:$8 sps:$4 sm:$0xff]  }
  0x9f   :  { %947 = vmatpush1.bf16.msra.mxu1 %v1478_v8  ;;  %v1487_v8 = vld [vmem:[#allocation10 + $0x40] sm:$0xff]  }
  0xa0   :  { %948 = vmatprep.subr.bf16.mxu1 %v1483_v1 }
  0xa3   :  { %949 = vmatpush1.bf16.msra.mxu1 %v1481_v3 }
  0xa4   :  { %950 = vmatprep.subr.bf16.mxu1 %v1486_v5 }
  0xa7   :  { %951 = vmatpush1.bf16.msra.mxu1 %v1484_v6 }
  0xa8   :  { %1293 = vmatprep.subr.bf16.mxu1 %v1487_v8 }
 0x134   :  { %v180_v11 = vpop.f32.mrb[0].mxu1 }
 0x135   :  { %v181_v12 = vadd.f32 %v180_v11, %v105_v9  ;;  %v182_v13 = vpop.f32.mrb[1].mxu1  ;;  %v92_v9 = vld [vmem:[%s1814_s5 + $0x4] sm:$0x3] }
 0x136   :  { %v183_v14 = vadd.f32 %v182_v13, %v109_v10  ;;  %v184_v15 = vpop.f32.mrb[2].mxu1  ;;  %v304_v10 = vrot.slane %v92_v9, %v1763_v4  ;;  %v308_v11 = vrot.slane %v92_v9, %v1771_v7 }
 0x137   :  { %v228_v17 = vmax.f32 %v181_v12, 0.0  ;;  %v185_v18 = vpop.f32.mrb[3].mxu1 }
 0x138   :  { %v229_v19 = vmax.f32 %v183_v14, 0.0 }
 0x139   :  { %v232_v23 = vpack.c.bf16 %v228_v17, %v228_v17 }
 0x13a   :  { %v233_v20 = vpack.c.bf16 %v229_v19, %v229_v19 }
 0x13c   :  { %663 = vmatprep.mubr.bf16.mxu0 %v233_v20  ;;  %v1779_v25 = vpop.f32.mrb[4].mxu1 }
 0x13d   :  { %664 = vmatmul.mubr.bf16.vlgmr.msra.gmra.mrb[0].mxu0 %v232_v23  ;;  %v223_v26 = vpop.f32.mrb[5].mxu1  ;;  %v222_v61 = vadd.f32 %v1779_v25, %v113_v58  ;;  %v1489_v23 = vld [vmem:[#allocation10 + $0x48] sm:$0xff]   ;;  %v1491_v25 = vld [vmem:[#allocation10 + $0x50] sm:$0xff]  }
 0x13e   :  { %673 = vmatpush1.bf16.msra.mxu0 %v1391_v21  ;;  %v224_v28 = vadd.f32 %v223_v26, %v117_v22  ;;  %v225_v29 = vpop.f32.mrb[6].mxu1  ;;  %v1488_v21 = vld [vmem:[#allocation10] sm:$0xff]   ;;  %v1492_v26 = vld [vmem:[#allocation10 + $0x10] sm:$0xff]  }
 0x13f   :  { %674 = vmatprep.subr.bf16.mxu0 %v1396_v24  ;;  %v226_v31 = vpop.f32.mrb[7].mxu1  ;;  %v230_v0 = vmax.f32 %v222_v61, 0.0  ;;  %v1490_v24 = vld [vmem:[#allocation10 + $0x8] sm:$0xff]   ;;  %v1495_v29 = vld [vmem:[#allocation10 + $0x60] sm:$0xff]  }
 0x140   :  { %v231_v32 = vmax.f32 %v224_v28, 0.0  ;;  %v1494_v28 = vld [vmem:[#allocation10 + $0x18] sm:$0xff]   ;;  %v1497_v31 = vld [vmem:[#allocation10 + $0x68] sm:$0xff]  }
 0x141   :  { %v234_v2 = vpack.c.bf16 %v230_v0, %v230_v0 }
 0x142   :  { %675 = vmatpush1.bf16.msra.mxu0 %v1394_v27  ;;  %v235_v34 = vpack.c.bf16 %v231_v32, %v231_v32  ;;  %v1493_v27 = vld [vmem:[#allocation10 + $0x58] sm:$0xff]   ;;  %v1498_v32 = vld [vmem:[#allocation10 + $0x28] sm:$0xff]  }
 0x143   :  { %676 = vmatprep.subr.bf16.mxu0 %v1399_v30  ;;  %v1496_v30 = vld [vmem:[#allocation10 + $0x20] sm:$0xff]  }
 0x144   :  { %704 = vmatprep.mubr.bf16.mxu0 %v235_v34  ;;  %v1500_v34 = vld [vmem:[#allocation10 + $0x30] sm:$0xff]  }
 0x146   :  { %677 = vmatpush1.bf16.msra.mxu0 %v1397_v33  ;;  %v1499_v33 = vld [vmem:[#allocation10 + $0x70] sm:$0xff]  }
 0x147   :  { %678 = vmatprep.subr.bf16.mxu0 %v1402_v35  ;;  %v1501_v35 = vld [vmem:[#allocation10 + $0x78] sm:$0xff]  }
 0x14a   :  { %679 = vmatpush1.bf16.msra.mxu0 %v1400_v36  ;;  %v1502_v36 = vld [vmem:[#allocation10 + $0x38] sm:$0xff]  }
 0x14b   :  { %680 = vmatprep.subr.bf16.mxu0 %v1405_v37  ;;  %v93_v37 = vld [vmem:[%s1814_s5 + $0x6] sm:$0x3] }
 0x14e   :  { %681 = vmatpush1.bf16.msra.mxu0 %v1403_v38  ;;  %v753_v38 = vrot.slane %v93_v37, %v1763_v4 }
 0x14f   :  { %682 = vmatprep.subr.bf16.mxu0 %v1408_v39  ;;  %v757_v39 = vrot.slane %v93_v37, %v1771_v7 }
 0x152   :  { %683 = vmatpush1.bf16.msra.mxu0 %v1406_v40 }
 0x153   :  { %684 = vmatprep.subr.bf16.mxu0 %v1411_v41 }
 0x156   :  { %685 = vmatpush1.bf16.msra.mxu0 %v1409_v42 }
 0x157   :  { %686 = vmatprep.subr.bf16.mxu0 %v1414_v43 }
 0x15a   :  { %687 = vmatpush1.bf16.msra.mxu0 %v1412_v44 }
 0x15b   :  { %688 = vmatprep.subr.bf16.mxu0 %v1417_v45 }
 0x15e   :  { %689 = vmatpush1.bf16.msra.mxu0 %v1415_v46 }
 0x15f   :  { %690 = vmatprep.subr.bf16.mxu0 %v1420_v47 }
 0x162   :  { %691 = vmatpush1.bf16.msra.mxu0 %v1418_v48 }
 0x163   :  { %692 = vmatprep.subr.bf16.mxu0 %v1423_v49 }
 0x166   :  { %693 = vmatpush1.bf16.msra.mxu0 %v1421_v50 }
 0x167   :  { %694 = vmatprep.subr.bf16.mxu0 %v1426_v51  ;;  %v1276_v51 = vld [vmem:[%s1814_s5 + $0x8] ss:$0 sm:$0xff]  ;;  %s1613_s5 = scalar_lea.vmem %s1164_s19, 32 }
 0x168   :  { %p1614_p12 = scmp.ne.s32.totalorder %s1164_s19, %s1613_s5  ;;  %p1619_p0 = scmp.lt.s32.totalorder %s1613_s5, %s1613_s5 }
 0x16a   :  { %695 = vmatpush1.bf16.msra.mxu0 %v1424_v52  ;;  %p1620_p1 = por %p1619_p0, %p1618_p13 }
 0x16b   :  { %696 = vmatprep.subr.bf16.mxu0 %v1429_v53 }
 0x16c   :  { %p1621_p2 = pnand %p1620_p1, %p1614_p12 }
 0x16e   :  { %697 = vmatpush1.bf16.msra.mxu0 %v1427_v54 }
 0x16f   :  { %698 = vmatprep.subr.bf16.mxu0 %v1432_v56 }
 0x172   :  { %699 = vmatpush1.bf16.msra.mxu0 %v1430_v57 }
 0x173   :  { %700 = vmatprep.subr.bf16.mxu0 %v1435_v59 }
 0x176   :  { %701 = vmatpush1.bf16.msra.mxu0 %v1433_v60 }
 0x177   :  { %702 = vmatprep.subr.bf16.mxu0 %v1438_v62 }
 0x17a   :  { %703 = vmatpush1.bf16.msra.mxu0 %v1436_v63 }
 0x17d   :  { %705 = vmatmul.mubr.bf16.vlgmr.msra.gmra.mrb[0].mxu0 %v234_v2 }
 0x250   :  { %v706_v12 = vpop.f32.mrb[0].mxu0 }
 0x251   :  { %v1315_v13 = vadd.f32 %v706_v12, %v304_v10  ;;  %v708_v14 = vpop.f32.mrb[1].mxu0 }
 0x252   :  { %v1316_v15 = vadd.f32 %v708_v14, %v308_v11  ;;  %v710_v16 = vpop.f32.mrb[2].mxu0 }
 0x253   :  { %v713_v17 = vmax.f32 %v1315_v13, 0.0  ;;  %v711_v18 = vpop.f32.mrb[3].mxu0 }
 0x254   :  { %v714_v19 = vmax.f32 %v1316_v15, 0.0 }
 0x255   :  { %v715_v22 = vpack.c.bf16 %v713_v17, %v713_v17 }
 0x256   :  { %v716_v20 = vpack.c.bf16 %v714_v19, %v714_v19 }
 0x258   :  { %952 = vmatprep.mubr.bf16.mxu1 %v716_v20 }
 0x259   :  { %953 = vmatmul.mubr.bf16.vlgmr.msra.gmra.mrb[8].mxu1 %v715_v22 }
 0x25a   :  { %1294 = vmatpush3.bf16.msra.mxu1 %v1488_v21 }
 0x25b   :  { %1295 = vmatprep.subr.bf16.mxu1 %v1489_v23 }
 0x25e   :  { %1296 = vmatpush3.bf16.msra.mxu1 %v1490_v24 }
 0x25f   :  { %1297 = vmatprep.subr.bf16.mxu1 %v1491_v25 }
 0x262   :  { %1298 = vmatpush3.bf16.msra.mxu1 %v1492_v26 }
 0x263   :  { %1299 = vmatprep.subr.bf16.mxu1 %v1493_v27 }
 0x266   :  { %1300 = vmatpush3.bf16.msra.mxu1 %v1494_v28 }
 0x267   :  { %1301 = vmatprep.subr.bf16.mxu1 %v1495_v29 }
 0x26a   :  { %1302 = vmatpush3.bf16.msra.mxu1 %v1496_v30 }
 0x26b   :  { %1303 = vmatprep.subr.bf16.mxu1 %v1497_v31 }
 0x26e   :  { %1304 = vmatpush3.bf16.msra.mxu1 %v1498_v32 }
 0x26f   :  { %1305 = vmatprep.subr.bf16.mxu1 %v1499_v33 }
 0x272   :  { %1306 = vmatpush3.bf16.msra.mxu1 %v1500_v34 }
 0x273   :  { %1307 = vmatprep.subr.bf16.mxu1 %v1501_v35 }
 0x276   :  { %1308 = vmatpush3.bf16.msra.mxu1 %v1502_v36 }
 0x32c   :  { %v954_v40 = vpop.f32.mrb[8].mxu1 }
 0x32d   :  { %v955_v41 = vadd.f32 %v954_v40, %v753_v38  ;;  %v956_v42 = vpop.f32.mrb[9].mxu1 }
 0x32e   :  { %v957_v43 = vadd.f32 %v956_v42, %v757_v39  ;;  %v958_v44 = vpop.f32.mrb[10].mxu1 }
 0x32f   :  { %v961_v45 = vmax.f32 %v955_v41, 0.0  ;;  %v959_v46 = vpop.f32.mrb[11].mxu1 }
 0x330   :  { %v962_v47 = vmax.f32 %v957_v43, 0.0 }
 0x331   :  { %v963_v49 = vpack.c.bf16 %v961_v45, %v961_v45 }
 0x332   :  { %v964_v48 = vpack.c.bf16 %v962_v47, %v962_v47 }
 0x334   :  { %1131 = vmatprep.mubr.bf16.mxu1 %v964_v48 }
 0x335   :  { %1132 = vmatmul.mubr.bf16.vlgmr.msra.gmra.mrb[12].mxu1 %v963_v49 }
 0x408   :  { %v1309_v50 = vpop.f32.mrb[12].mxu1 }
 0x409   :  { %v1310_v4 = vpop.f32.mrb[13].mxu1 }
 0x40a   :  { %v1311_v52 = vadd.f32 %v1310_v4, %v1309_v50  ;;  %v1312_v7 = vpop.f32.mrb[14].mxu1 }
 0x40b   :  { %v1313_v53 = vpop.f32.mrb[15].mxu1 }
 0x40c   :  { %v1134_v54 = vadd.f32 %v1311_v52, %v1276_v51 }
 0x40e   :  { %1140 = vrot.lane.b32.xlu0 %v1134_v54, %s1655_s17 }
 0x480   :  { %v1141_v55 = vpop.permute.xlu0 %1140 }
 0x481   :  { %v1144_v56 = vsel %vm1143_vm1, %v1141_v55, 0.0 }
 0x482   :  { %1145 = vadd.xlane.f32.xlu0 %v1144_v56 }
 0x50f   :  { %v1146_v57 = vpop.xlane.xlu0 %1145 }
 0x510   :  { %v1148_v58 = vmul.f32 0.125, %v1146_v57 }
 0x512   :  { %v1149_v59 = vsub.f32 %v1134_v54, %v1148_v58 }
 0x514   :  { %1152 = vperm.xlu1 %1335, %v1149_v59  }
 0x593   :  { %v1153_v60 = vpop.permute.xlu1 %1152 }
 0x594   :  { %v1155_v61 = vadd.f32 %v1153_v60, %v1134_v54 }
 0x596   :  { %1156 = vst [vmem:[#allocation11] sm:$0x3] %v1155_v61 }
 0x597   :  { %1624 = shalt.err (!%p1621_p2)
}
 0x598   :  { %s1625_s1 = scalar_lea.hbm %s1815_s6, 32 }
 0x599   :  { %p1626_p3 = scmp.ne.s32.totalorder %s1815_s6, %s1625_s1  ;;  %p1629_p4 = scmp.lt.u32.totalorder %s1625_s1, %s1815_s6 }
 0x59b   :  { %p1631_p5 = pnand %p1629_p4, %p1626_p3 }
 0x59d   :  { %1634 = shalt.err (!%p1631_p5)
}
 0x59e   :  { %1166 = dma.vmem_to_hbm [thread:$0]  %s1164_s19, 32, %s1815_s6, [#allocation4]  }
 0x59f   :  { %1641 = dma.done.wait [#allocation4], 32  }
 0x5a0   :  { %1642 = vsyncadd [#allocation4], 4294967264 }
 0x5a1   :  { %1170 = vsyncpa [#allocation3], 1 }
 0x5a2   :  { %1171 = vsyncpa [#allocation6], 1 }
 0x5a3   :  { %1172 = vsyncpa [#allocation9], 1 }
 0x5a4   :  { %1173 = vsyncpa [#allocation4], 1 }

</bundles_post_ra>
